<compile_context>
chip_gen: v7x
topology: tpu7x:2x2x1
jax: 0.10.0
libtpu: 0.0.40
codegen_flags: <defaults>
</compile_context>

<pallas_src>
import math

import jax
import jax.numpy as jnp
from jax.experimental import pallas as pl
from jax.experimental.pallas import tpu as pltpu

_MiB = 1024 * 1024


def _gelu_exact(h):
    # Exact (erf-based) GELU, matching torch.nn.GELU() default.
    return 0.5 * h * (1.0 + jax.lax.erf(h * (1.0 / math.sqrt(2.0))))


# ----------------------------- kernels --------------------------------------


def _ffn_resident_kernel(x_ref, w1_ref, b1_ref, w2_ref, b2_ref, o_ref):
    # Full weights resident in VMEM; one row tile per grid step.
    h = jnp.dot(x_ref[...], w1_ref[...], preferred_element_type=jnp.float32)
    h = _gelu_exact(h + b1_ref[...].astype(jnp.float32))
    y = jnp.dot(h.astype(w2_ref.dtype), w2_ref[...],
                preferred_element_type=jnp.float32)
    o_ref[...] = (y + b2_ref[...].astype(jnp.float32)).astype(o_ref.dtype)


def _ffn_stream_inplace_kernel(x_ref, w1_ref, b1_ref, w2_ref, b2_ref, o_ref):
    # Streaming d_ff; o_ref is float32 and resident across the f axis, so it
    # doubles as the accumulator (no scratch needed).
    f = pl.program_id(1)

    @pl.when(f == 0)
    def _():
        o_ref[...] = jnp.zeros_like(o_ref)

    h = jnp.dot(x_ref[...], w1_ref[...], preferred_element_type=jnp.float32)
    h = _gelu_exact(h + b1_ref[...].astype(jnp.float32))
    o_ref[...] += jnp.dot(h.astype(w2_ref.dtype), w2_ref[...],
                          preferred_element_type=jnp.float32)

    @pl.when(f == pl.num_programs(1) - 1)
    def _():
        o_ref[...] = o_ref[...] + b2_ref[...].astype(jnp.float32)


def _ffn_stream_acc_kernel(x_ref, w1_ref, b1_ref, w2_ref, b2_ref, o_ref,
                           acc_ref):
    # Streaming d_ff; non-f32 output -> accumulate in an f32 VMEM scratch.
    f = pl.program_id(1)

    @pl.when(f == 0)
    def _():
        acc_ref[...] = jnp.zeros_like(acc_ref)

    h = jnp.dot(x_ref[...], w1_ref[...], preferred_element_type=jnp.float32)
    h = _gelu_exact(h + b1_ref[...].astype(jnp.float32))
    acc_ref[...] += jnp.dot(h.astype(w2_ref.dtype), w2_ref[...],
                            preferred_element_type=jnp.float32)

    @pl.when(f == pl.num_programs(1) - 1)
    def _():
        o_ref[...] = (acc_ref[...]
                      + b2_ref[...].astype(jnp.float32)).astype(o_ref.dtype)


# --------------------------- tile planning ----------------------------------


def _round_up(x, m):
    return ((x + m - 1) // m) * m


def _vmem_capacity_bytes():
    try:
        info = pltpu.get_tpu_info()
        for name in ("vmem_capacity_bytes", "vmem_size_bytes", "vmem_bytes"):
            cap = getattr(info, name, None)
            if cap:
                return int(cap)
    except Exception:
        pass
    return 64 * _MiB  # conservative (v7x-sized) fallback


def _tm_candidates(tm_max, sub):
    cands = []
    t = (tm_max // sub) * sub
    if t >= sub:
        cands.append(t)
    t = (tm_max // 128) * 128
    while t >= 128:
        cands.append(t)
        t -= 128
    for t in (64, 32, 16, 8):
        if sub <= t <= tm_max:
            cands.append(t)
    if not cands:
        cands = [sub]
    return sorted(set(cands), reverse=True)


def _tf_candidates(d_ff, base):
    """Return [(tf, padded_d_ff), ...], largest tf first."""
    if d_ff <= base:
        return [(d_ff, d_ff)]
    cands = []
    t = base
    while t >= 128:
        if d_ff % t == 0:
            cands.append((t, d_ff))
        t -= 128
    if not cands:
        # No multiple-of-128 divisor of d_ff <= base: zero-pad d_ff (exact:
        # padded W2 rows are zero, so the padded hidden columns contribute 0).
        for t in (base, 256, 128):
            if t <= base and (t, _round_up(d_ff, t)) not in cands:
                cands.append((t, _round_up(d_ff, t)))
    return cands


def _plan(N, d_model, d_ff, x_bytes, w_bytes, out_bytes, use_acc,
          force_streaming=False):
    cap = _vmem_capacity_bytes()
    if cap <= 64 * _MiB:   # v7x-class: 64 MiB VMEM per TensorCore
        budget, limit, tm_target, tf_base = 46 * _MiB, 56 * _MiB, 512, 256
    else:                  # v5e / v6e: 128 MiB VMEM
        budget, limit, tm_target, tf_base = 88 * _MiB, 100 * _MiB, 1024, 512

    sub = 8 if (x_bytes >= 4 and out_bytes >= 4) else 16
    n_cap = _round_up(max(N, sub), sub)
    tm_cands = _tm_candidates(min(tm_target, n_cap), sub)

    bias_fp = 2 * (d_ff + d_model) * w_bytes

    # -- resident-weights fast path: W1/W2 DMA'd once, not once per row tile --
    if not force_streaming:
        w_fp = 2 * (2 * d_model * d_ff * w_bytes) + bias_fp  # assume 2x buffered
        for tm in tm_cands:
            fp = w_fp + 2 * tm * d_model * (x_bytes + out_bytes)
            if fp <= budget and tm >= min(128, n_cap):
                return dict(mode="resident", tm=tm, tf=d_ff, d_ff_pad=d_ff,
                            vmem_limit=limit)

    # -- streaming path: tile d_ff; prioritize large tm (arithmetic intensity
    #    ~ tm FLOP per re-streamed weight byte) --
    tf_cands = _tf_candidates(d_ff, tf_base)
    for tm in tm_cands:
        for tf, d_ff_pad in tf_cands:
            fp = (2 * tm * d_model * (x_bytes + out_bytes)
                  + 2 * 2 * d_model * tf * w_bytes
                  + bias_fp
                  + (tm * d_model * 4 if use_acc else 0))
            if fp <= budget:
                return dict(mode="stream", tm=tm, tf=tf, d_ff_pad=d_ff_pad,
                            vmem_limit=limit)

    tf, d_ff_pad = tf_cands[-1]
    return dict(mode="stream", tm=tm_cands[-1], tf=tf, d_ff_pad=d_ff_pad,
                vmem_limit=limit)


# ----------------------------- wrapper ---------------------------------------


def feed_forward_layer(x, w1, b1, w2, b2, *, matmul_dtype=None,
                       _force_streaming=False):
    """Fused Linear -> GELU -> Linear (Dropout = identity, eval mode).

    x: [B, T, d_model]; w1: [d_model, d_ff]; b1: [d_ff] or [1, d_ff];
    w2: [d_ff, d_model]; b2: [d_model] or [1, d_model].
    """
    B, T, d_model = x.shape
    d_ff = w1.shape[1]
    N = B * T
    out_dtype = x.dtype

    b1 = jnp.asarray(b1).reshape(1, d_ff)
    b2 = jnp.asarray(b2).reshape(1, d_model)

    x2 = x.reshape(N, d_model)
    if matmul_dtype is not None:
        # Optional reduced-precision MXU path (f32 accumulation retained).
        x2 = x2.astype(matmul_dtype)
        w1 = w1.astype(matmul_dtype)
        w2 = w2.astype(matmul_dtype)

    x_bytes = x2.dtype.itemsize
    w_bytes = w1.dtype.itemsize
    out_bytes = jnp.dtype(out_dtype).itemsize
    use_acc = out_dtype != jnp.float32

    plan = _plan(N, d_model, d_ff, x_bytes, w_bytes, out_bytes, use_acc,
                 force_streaming=_force_streaming)
    tm, tf, d_ff_pad = plan["tm"], plan["tf"], plan["d_ff_pad"]

    # Zero-pad d_ff if needed (exact: padded W2 rows are zero).
    if d_ff_pad != d_ff:
        w1 = jnp.pad(w1, ((0, 0), (0, d_ff_pad - d_ff)))
        b1 = jnp.pad(b1, ((0, 0), (0, d_ff_pad - d_ff)))
        w2 = jnp.pad(w2, ((0, d_ff_pad - d_ff), (0, 0)))

    # Zero-pad ragged N (only when N % tm != 0).
    n_pad = _round_up(N, tm)
    if n_pad != N:
        x2 = jnp.pad(x2, ((0, n_pad - N), (0, 0)))
    rows = n_pad // tm

    def _nbytes(a):
        return a.size * a.dtype.itemsize

    act_bytes = _nbytes(x2) + n_pad * d_model * out_bytes
    weight_bytes = _nbytes(w1) + _nbytes(b1) + _nbytes(w2) + _nbytes(b2)

    if plan["mode"] == "resident":
        grid = (rows,)
        in_specs = [
            pl.BlockSpec((tm, d_model), lambda i: (i, 0)),         # x tile
            pl.BlockSpec((d_model, d_ff_pad), lambda i: (0, 0)),   # W1 resident
            pl.BlockSpec((1, d_ff_pad), lambda i: (0, 0)),         # b1
            pl.BlockSpec((d_ff_pad, d_model), lambda i: (0, 0)),   # W2 resident
            pl.BlockSpec((1, d_model), lambda i: (0, 0)),          # b2
        ]
        out_specs = pl.BlockSpec((tm, d_model), lambda i: (i, 0))
        scratch_shapes = []
        kernel = _ffn_resident_kernel
        dims = ("parallel",)
        bytes_accessed = act_bytes + weight_bytes            # weights DMA'd once
    else:
        grid = (rows, d_ff_pad // tf)
        in_specs = [
            pl.BlockSpec((tm, d_model), lambda i, f: (i, 0)),      # x tile
            pl.BlockSpec((d_model, tf), lambda i, f: (0, f)),      # W1 col slice
            pl.BlockSpec((1, tf), lambda i, f: (0, f)),            # b1 slice
            pl.BlockSpec((tf, d_model), lambda i, f: (f, 0)),      # W2 row slice
            pl.BlockSpec((1, d_model), lambda i, f: (0, 0)),       # b2
        ]
        out_specs = pl.BlockSpec((tm, d_model), lambda i, f: (i, 0))
        if use_acc:
            scratch_shapes = [pltpu.VMEM((tm, d_model), jnp.float32)]
            kernel = _ffn_stream_acc_kernel
        else:
            scratch_shapes = []
            kernel = _ffn_stream_inplace_kernel
        dims = ("parallel", "arbitrary")
        bytes_accessed = act_bytes + rows * weight_bytes      # re-streamed / row tile

    cost = pl.CostEstimate(
        flops=4 * n_pad * d_model * d_ff,    # two matmuls, 2*M*K*N each
        transcendentals=n_pad * d_ff,        # advisory: one erf per hidden elem
        bytes_accessed=int(bytes_accessed),
    )

    out2 = pl.pallas_call(
        kernel,
        out_shape=jax.ShapeDtypeStruct((n_pad, d_model), out_dtype),
        grid_spec=pltpu.PrefetchScalarGridSpec(
            num_scalar_prefetch=0,
            grid=grid,
            in_specs=in_specs,
            out_specs=out_specs,
            scratch_shapes=scratch_shapes,
        ),
        compiler_params=pltpu.CompilerParams(
            dimension_semantics=dims,
            vmem_limit_bytes=int(plan["vmem_limit"]),
        ),
        cost_estimate=cost,
    )(x2, w1, b1, w2, b2)

    if n_pad != N:
        out2 = out2[:N]
    return out2.reshape(B, T, d_model)


def init_params(key, d_model, d_ff, dtype=jnp.float32):
    """Deterministic init matching nn.Linear shapes (weights stored transposed)."""
    k1, k2, k3, k4 = jax.random.split(key, 4)
    bound1 = 1.0 / math.sqrt(d_model)
    bound2 = 1.0 / math.sqrt(d_ff)
    w1 = jax.random.uniform(k1, (d_model, d_ff), dtype, -bound1, bound1)
    b1 = jax.random.uniform(k2, (1, d_ff), dtype, -bound1, bound1)
    w2 = jax.random.uniform(k3, (d_ff, d_model), dtype, -bound2, bound2)
    b2 = jax.random.uniform(k4, (1, d_model), dtype, -bound2, bound2)
    return w1, b1, w2, b2


if __name__ == "__main__":
    key = jax.random.PRNGKey(0)
    k1, k2, k3, k4, k5, k6 = jax.random.split(key, 6)

    def _reference(x, w1, b1, w2, b2):
        xf = x.reshape(-1, x.shape[-1]).astype(jnp.float32)
        h = xf @ w1.astype(jnp.float32) + jnp.asarray(b1, jnp.float32).reshape(1, -1)
        h = 0.5 * h * (1.0 + jax.lax.erf(h / math.sqrt(2.0)))
        y = h @ w2.astype(jnp.float32) + jnp.asarray(b2, jnp.float32).reshape(1, -1)
        return y.reshape(x.shape)

    # 1) Small f32 case -> resident-weights fast path.
    B, T, d_model, d_ff = 2, 8, 32, 64
    x = jax.random.normal(k1, (B, T, d_model), jnp.float32)
    w1, b1, w2, b2 = init_params(k2, d_model, d_ff)
    out = jax.block_until_ready(feed_forward_layer(x, w1, b1, w2, b2))
    ref = _reference(x, w1, b1, w2, b2)
    assert jnp.allclose(out, ref, atol=1e-5, rtol=1e-5), "resident path mismatch"

    # 2) f32, forced streaming (d_ff tiled, ragged N) -> in-place f32 accumulation.
    B, T, d_model, d_ff = 2, 21, 128, 640
    x = jax.random.normal(k3, (B, T, d_model), jnp.float32)
    w1, b1, w2, b2 = init_params(k4, d_model, d_ff)
    out = jax.block_until_ready(
        feed_forward_layer(x, w1, b1, w2, b2, _force_streaming=True))
    ref = _reference(x, w1, b1, w2, b2)
    assert jnp.allclose(out, ref, atol=1e-3, rtol=1e-3), "streaming f32 path mismatch"

    # 3) bf16, forced streaming -> f32 scratch-accumulator kernel.
    B, T, d_model, d_ff = 2, 24, 128, 640
    x = jax.random.normal(k5, (B, T, d_model), jnp.float32).astype(jnp.bfloat16)
    w1, b1, w2, b2 = init_params(k6, d_model, d_ff, dtype=jnp.bfloat16)
    out = jax.block_until_ready(
        feed_forward_layer(x, w1, b1, w2, b2, _force_streaming=True))
    ref = _reference(x.astype(jnp.float32), w1, b1, w2, b2)
    assert jnp.allclose(out.astype(jnp.float32), ref, atol=3e-2, rtol=3e-2), \
        "streaming bf16 path mismatch"

    print("KERNEL_OK")
</pallas_src>

<mosaic_0001>
module attributes {stable_mosaic.version = 11 : i64} {
  func.func @_ffn_resident_kernel(%arg0: i32, %arg1: memref<16x32xf32, #tpu.memory_space<vmem>>, %arg2: memref<32x64xf32, #tpu.memory_space<vmem>>, %arg3: memref<1x64xf32, #tpu.memory_space<vmem>>, %arg4: memref<64x32xf32, #tpu.memory_space<vmem>>, %arg5: memref<1x32xf32, #tpu.memory_space<vmem>>, %arg6: memref<16x32xf32, #tpu.memory_space<vmem>>) attributes {dimension_semantics = [#tpu.dimension_semantics<parallel>], iteration_bounds = array<i64: 1>, scalar_prefetch = 0 : i64, scratch_operands = 0 : i64, tpu.core_type = #tpu.core_type<tc>, window_params = [{transform_indices = @transform_0, window_bounds = array<i64: 16, 32>}, {pipeline_mode = #tpu.pipeline_mode<synchronous>, transform_indices = @transform_1, window_bounds = array<i64: 32, 64>}, {pipeline_mode = #tpu.pipeline_mode<synchronous>, transform_indices = @transform_2, window_bounds = array<i64: 1, 64>}, {pipeline_mode = #tpu.pipeline_mode<synchronous>, transform_indices = @transform_3, window_bounds = array<i64: 64, 32>}, {pipeline_mode = #tpu.pipeline_mode<synchronous>, transform_indices = @transform_4, window_bounds = array<i64: 1, 32>}, {transform_indices = @transform_5, window_bounds = array<i64: 16, 32>}]} {
    %c0 = arith.constant 0 : index
    %c0_0 = arith.constant 0 : index
    %0 = vector.load %arg1[%c0, %c0_0] : memref<16x32xf32, #tpu.memory_space<vmem>>, vector<16x32xf32>
    %c0_1 = arith.constant 0 : index
    %c0_2 = arith.constant 0 : index
    %1 = vector.load %arg2[%c0_1, %c0_2] : memref<32x64xf32, #tpu.memory_space<vmem>>, vector<32x64xf32>
    %cst = arith.constant dense<0.000000e+00> : vector<16x64xf32>
    %2 = tpu.matmul %0, %1, %cst {dimension_numbers = #tpu.dot_dimension_numbers<[1], [0], [0], [1], [0, 0, 1, 1], [], []>} : vector<16x32xf32>, vector<32x64xf32>, vector<16x64xf32> -> vector<16x64xf32>
    %c0_3 = arith.constant 0 : index
    %c0_4 = arith.constant 0 : index
    %3 = vector.load %arg3[%c0_3, %c0_4] : memref<1x64xf32, #tpu.memory_space<vmem>>, vector<1x64xf32>
    %4 = vector.broadcast %3 : vector<1x64xf32> to vector<16x64xf32>
    %5 = arith.addf %2, %4 : vector<16x64xf32>
    %cst_5 = arith.constant 5.000000e-01 : f32
    %6 = vector.broadcast %cst_5 : f32 to vector<16x64xf32>
    %7 = arith.mulf %6, %5 : vector<16x64xf32>
    %cst_6 = arith.constant 0.707106769 : f32
    %8 = vector.broadcast %cst_6 : f32 to vector<16x64xf32>
    %9 = arith.mulf %5, %8 : vector<16x64xf32>
    %10 = math.erf %9 : vector<16x64xf32>
    %cst_7 = arith.constant 1.000000e+00 : f32
    %11 = vector.broadcast %cst_7 : f32 to vector<16x64xf32>
    %12 = arith.addf %11, %10 : vector<16x64xf32>
    %13 = arith.mulf %7, %12 : vector<16x64xf32>
    %c0_8 = arith.constant 0 : index
    %c0_9 = arith.constant 0 : index
    %14 = vector.load %arg4[%c0_8, %c0_9] : memref<64x32xf32, #tpu.memory_space<vmem>>, vector<64x32xf32>
    %cst_10 = arith.constant dense<0.000000e+00> : vector<16x32xf32>
    %15 = tpu.matmul %13, %14, %cst_10 {dimension_numbers = #tpu.dot_dimension_numbers<[1], [0], [0], [1], [0, 0, 1, 1], [], []>} : vector<16x64xf32>, vector<64x32xf32>, vector<16x32xf32> -> vector<16x32xf32>
    %c0_11 = arith.constant 0 : index
    %c0_12 = arith.constant 0 : index
    %16 = vector.load %arg5[%c0_11, %c0_12] : memref<1x32xf32, #tpu.memory_space<vmem>>, vector<1x32xf32>
    %17 = vector.broadcast %16 : vector<1x32xf32> to vector<16x32xf32>
    %18 = arith.addf %15, %17 : vector<16x32xf32>
    %c0_13 = arith.constant 0 : index
    %c0_14 = arith.constant 0 : index
    %19 = vector.load %arg6[%c0_13, %c0_14] : memref<16x32xf32, #tpu.memory_space<vmem>>, vector<16x32xf32>
    tpu.vector_store %arg6[%c0_13, %c0_14], %18 {strides = array<i32>} : memref<16x32xf32, #tpu.memory_space<vmem>>, vector<16x32xf32>,
    return
  }
  func.func @transform_0(%arg0: i32) -> (i32, i32) {
    %c0_i32 = arith.constant 0 : i32
    %c0_i32_0 = arith.constant 0 : i32
    return %arg0, %c0_i32 : i32, i32
  }
  func.func @transform_1(%arg0: i32) -> (i32, i32) {
    %c0_i32 = arith.constant 0 : i32
    %c0_i32_0 = arith.constant 0 : i32
    %c0_i32_1 = arith.constant 0 : i32
    return %c0_i32, %c0_i32_0 : i32, i32
  }
  func.func @transform_2(%arg0: i32) -> (i32, i32) {
    %c0_i32 = arith.constant 0 : i32
    %c0_i32_0 = arith.constant 0 : i32
    %c0_i32_1 = arith.constant 0 : i32
    return %c0_i32, %c0_i32_0 : i32, i32
  }
  func.func @transform_3(%arg0: i32) -> (i32, i32) {
    %c0_i32 = arith.constant 0 : i32
    %c0_i32_0 = arith.constant 0 : i32
    %c0_i32_1 = arith.constant 0 : i32
    return %c0_i32, %c0_i32_0 : i32, i32
  }
  func.func @transform_4(%arg0: i32) -> (i32, i32) {
    %c0_i32 = arith.constant 0 : i32
    %c0_i32_0 = arith.constant 0 : i32
    %c0_i32_1 = arith.constant 0 : i32
    return %c0_i32, %c0_i32_0 : i32, i32
  }
  func.func @transform_5(%arg0: i32) -> (i32, i32) {
    %c0_i32 = arith.constant 0 : i32
    %c0_i32_0 = arith.constant 0 : i32
    return %arg0, %c0_i32 : i32, i32
  }
}

</mosaic_0001>

<bundles_post_ra>
// kernel: tpu_custom_call.1
= control target key start
LH: loop header
LB: loop body
LE: loop exit
PB: predicated region body
PF: predicated region fallthrough
CT: control target
= control target key end

     0   :  { %vm34_vm0 = vcmask 261120   ;;  %s445_s0 = inlined_call_operand.vmem [shape: f32[16,32], index: 0, kind: input, shape index: {}]   ;;  %s446_s1 = inlined_call_operand.vmem [shape: f32[32,64], index: 1, kind: input, shape index: {}]   ;;  %s447_s2 = inlined_call_operand.vmem [shape: f32[1,64], index: 2, kind: input, shape index: {}]   ;;  %s448_s3 = inlined_call_operand.vmem [shape: f32[64,32], index: 3, kind: input, shape index: {}]   ;;  %s449_s4 = inlined_call_operand.vmem [shape: f32[1,32], index: 4, kind: input, shape index: {}]   ;;  %s450_s5 = inlined_call_operand.hbm [shape: f32[16,32], index: 5, kind: output, shape index: {}]  }
   0x1   :  { %v23_v0 = vld [vmem:[%s446_s1] sm:$0xff]  ;;  %v24_v1 = vld [vmem:[%s446_s1 + $0x8] sm:$0xff]  ;;  %v25_v2 = vld [vmem:[%s446_s1 + $0x10] sm:$0xff] }
   0x2   :  { %v293_v3 = vpack.c.bf16 %v24_v1, %v23_v0  ;;  %v26_v4 = vld [vmem:[%s446_s1 + $0x18] sm:$0xff]  ;;  %v21_v5 = vld [vmem:[%s445_s0] sm:$0xff] }
   0x3   :  { %v297_v6 = vpack.c.bf16 %v26_v4, %v25_v2  ;;  %271 = vmatprep.mubr.msk.f32.mxu0 %vm34_vm0, %v21_v5 }
   0x4   :  { %10 = vsyncpa [#allocation3], 0  ;;  %294 = vmatprep.subr.bf16.mxu0 %v293_v3  ;;  %v22_v7 = vld [vmem:[%s445_s0 + $0x8] sm:$0xff]  ;;  %v126_v8 = vld [vmem:[%s448_s3] sm:$0xff]  ;;  %vm141_vm1 = vcmask 523264   ;;  %s348_s21 = smov [#allocation2]  }
   0x5   :  { %296 = vmatpush3.bf16.msra.mxu0 %v293_v3  ;;  %v127_v9 = vld [vmem:[%s448_s3 + $0x8] sm:$0xff]  ;;  %v128_v11 = vld [vmem:[%s448_s3 + $0x10] sm:$0xff]  ;;  %v129_v12 = vld [vmem:[%s448_s3 + $0x18] sm:$0xff]  ;;  %s230_s22 = sshll.u32 %s348_s21, 4  ;;  %s231_s22 = int_to_ptr.vmem [resolvable:$true] %s230_s22 }
   0x6   :  { %298 = vmatprep.subr.bf16.mxu0 %v297_v6  ;;  %v301_v10 = vpack.c.bf16 %v127_v9, %v126_v8  ;;  %v305_v13 = vpack.c.bf16 %v129_v12, %v128_v11  ;;  %v130_v14 = vld [vmem:[%s448_s3 + $0x20] sm:$0xff]  ;;  %v131_v15 = vld [vmem:[%s448_s3 + $0x28] sm:$0xff]  ;;  %v132_v17 = vld [vmem:[%s448_s3 + $0x30] sm:$0xff]  ;;  %s324_s23 = scalar_lea.vmem %s231_s22, 256  ;;  %p329_p1 = scmp.lt.s32.totalorder %s231_s22, %s231_s22 }
   0x7   :  { %v309_v16 = vpack.c.bf16 %v131_v15, %v130_v14  ;;  %v133_v18 = vld [vmem:[%s448_s3 + $0x38] sm:$0xff]  ;;  %v241_v20 = vld [vmem:[%s447_s2] ss:$0 sm:$0xff]  ;;  %p325_p0 = scmp.ne.s32.totalorder %s231_s22, %s324_s23  ;;  %p330_p2 = scmp.lt.s32.totalorder %s324_s23, %s324_s23 }
   0x8   :  { %302 = vmatprep.subr.bf16.mxu1 %v301_v10  ;;  %v313_v19 = vpack.c.bf16 %v133_v18, %v132_v17  ;;  %v244_v35 = vld [vmem:[%s449_s4] ss:$0 sm:$0xff] }
   0x9   :  { %300 = vmatpush3.bf16.msra.mxu0 %v297_v6  ;;  %304 = vmatpush3.bf16.msra.mxu1 %v301_v10  ;;  %p331_p3 = por %p330_p2, %p329_p1 }
   0xa   :  { %306 = vmatprep.subr.bf16.mxu1 %v305_v13 }
   0xb   :  { %p332_p4 = pnand %p331_p3, %p325_p0 }
   0xc   :  { %272 = vmatmul.mubr.msk.f32.vlgmr.msra.gmra.mrb[0].mxu0 %vm34_vm0, %v22_v7 }
   0xd   :  { %308 = vmatpush3.bf16.msra.mxu1 %v305_v13 }
   0xe   :  { %310 = vmatprep.subr.bf16.mxu1 %v309_v16 }
  0x11   :  { %312 = vmatpush3.bf16.msra.mxu1 %v309_v16 }
  0x12   :  { %314 = vmatprep.subr.bf16.mxu1 %v313_v19 }
  0x15   :  { %316 = vmatpush3.bf16.msra.mxu1 %v313_v19 }
  0xdf   :  { %v273_v21 = vpop.f32.mrb[0].mxu0 }
  0xe0   :  { %v113_v22 = vadd.f32 %v273_v21, %v241_v20  ;;  %v107_v23 = vpop.f32.mrb[1].mxu0 }
  0xe1   :  { %v108_v24 = vadd.f32 %v241_v20, %v107_v23 }
  0xe2   :  { %v119_v25 = vmul.f32 0.70710677, %v113_v22  ;;  %v117_v32 = vmul.f32 0.5, %v113_v22 }
  0xe3   :  { %v118_v26 = vmul.f32 0.70710677, %v108_v24  ;;  %v116_v30 = vmul.f32 0.5, %v108_v24 }
  0xe4   :  { %320 = verf.f32 %v119_v25 }
  0xe5   :  { %322 = verf.f32 %v118_v26 }
  0xee   :  { %v321_v27 = vpop.eup %320 }
  0xef   :  { %v323_v28 = vpop.eup %322  ;;  %v123_v29 = vadd.f32 1.0, %v321_v27 }
  0xf0   :  { %v122_v31 = vadd.f32 1.0, %v323_v28 }
  0xf1   :  { %v125_v34 = vmul.f32 %v123_v29, %v117_v32 }
  0xf2   :  { %v124_v33 = vmul.f32 %v122_v31, %v116_v30 }
  0xf4   :  { %290 = vmatprep.mubr.msk.f32.mxu1 %vm141_vm1, %v124_v33 }
  0xf5   :  { %291 = vmatmul.mubr.msk.f32.vlgmr.msra.gmra.mrb[0].mxu1 %vm141_vm1, %v125_v34 }
 0x1c8   :  { %v292_v36 = vpop.f32.mrb[0].mxu1 }
 0x1c9   :  { %v220_v37 = vadd.f32 %v292_v36, %v244_v35  ;;  %v214_v38 = vpop.f32.mrb[1].mxu1 }
 0x1ca   :  { %v215_v39 = vadd.f32 %v244_v35, %v214_v38 }
 0x1cb   :  { %224 = vst.msk [vmem:[#allocation2 + $0x8] sm:$0xff] %vm34_vm0, %v220_v37 }
 0x1cc   :  { %223 = vst.msk [vmem:[#allocation2] sm:$0xff] %vm34_vm0, %v215_v39 }
 0x1cd   :  { %335 = shalt.err (!%p332_p4)
}
 0x1ce   :  { %s336_s25 = scalar_lea.hbm %s450_s5, 256 }
 0x1cf   :  { %p337_p5 = scmp.ne.s32.totalorder %s450_s5, %s336_s25  ;;  %p340_p6 = scmp.lt.u32.totalorder %s336_s25, %s450_s5 }
 0x1d1   :  { %p342_p7 = pnand %p340_p6, %p337_p5 }
 0x1d3   :  { %345 = shalt.err (!%p342_p7)
}
 0x1d4   :  { %s349_s30 = smov 128   ;;  %s350_s1 = smov 8  }
 0x1d5   :  { %236 = dma.vmem_to_hbm [thread:$0]  %s231_s22, 256, %s450_s5, [#allocation3], %s349_s30, %s349_s30, %s350_s1  }
 0x1d6   :  { %346 = dma.done.wait [#allocation3], 256  }
 0x1d7   :  { %347 = vsyncadd [#allocation3], 4294967040 }
 0x1d8   :  { %240 = vsyncpa [#allocation3], 1 }

</bundles_post_ra>
